<compile_context>
chip_gen: v7x
topology: tpu7x:2x2x1
jax: 0.10.0
libtpu: 0.0.40
codegen_flags: <defaults>
</compile_context>

<pallas_src>
import jax
import jax.numpy as jnp
from jax import lax
from jax.experimental import pallas as pl
from jax.experimental.pallas import tpu as pltpu


def _mlp_kernel(x_ref, w_ref, b_ref, o_ref):
    # x_ref: (C, TN)   w_ref: (C, E)   b_ref: (1, E)   o_ref: (TN, E)
    # Contract over C directly from the channels-major layout: x^T @ W.
    acc = lax.dot_general(
        x_ref[...], w_ref[...],
        dimension_numbers=(((0,), (0,)), ((), ())),
        preferred_element_type=jnp.float32)            # (TN, E), f32 accumulate
    acc = acc + b_ref[...]                             # broadcast (1, E)
    # Epilogue hook: fuse any downstream elementwise op on the embedding here
    # (activation / positional add / norm scale) before the final cast.
    o_ref[...] = acc.astype(o_ref.dtype)


def _lane_pad(n, mult=128):
    return -(-n // mult) * mult


def _working_set_bytes(c, e, tn, itemsize=4):
    """VMEM bytes for double-buffered x/out tiles + resident (tiny) w/b."""
    e_pad = _lane_pad(e)                      # out/w blocks are lane-padded to 128
    tiles = 2 * (c * tn + tn * e_pad)         # x tile + out tile, 2 buffers each
    resident = 2 * (c * e_pad + 8 * e_pad)    # w + (sublane-padded) bias, 2 buffers
    return itemsize * (tiles + resident)


def _pick_token_tile(n, c, e, b, vmem_budget_bytes):
    """Largest lane-aligned token tile that fits the VMEM budget while still
    leaving >= 4 grid steps (pipeline overlap + both TCs on megacore parts)."""
    cands = [t for t in (8192, 4096, 2048, 1024, 512, 256, 128)
             if n % t == 0 and _working_set_bytes(c, e, t) <= vmem_budget_bytes]
    if not cands:
        return n                     # no lane-aligned divisor: untiled token dim
    for t in cands:                  # descending: biggest tile with >= 4 steps
        if b * (n // t) >= 4:
            return t
    return cands[-1]                 # tiny problem: maximize step count instead


def mlp_forward(x_nchw, w, b, *, tn=None, vmem_budget_bytes=12 << 20):
    """x_nchw: (B, C, H, W); w: (C, E); b: (E,).  Returns (B, H*W, E)."""
    B, C, H, W = x_nchw.shape
    E = w.shape[1]
    N = H * W

    # flatten(2) is free (row-major); the transpose is absorbed into the
    # kernel's contraction (no HBM round-trip).
    x = x_nchw.reshape(B, C, N)
    b2 = b.reshape(1, E)

    if tn is None:
        tn = _pick_token_tile(N, C, E, B, vmem_budget_bytes)
    if N % tn != 0:
        raise ValueError(f"token tile {tn} must divide H*W={N} (no tail masking)")
    grid = (B, N // tn)

    itemsize = jnp.dtype(x.dtype).itemsize
    cost = pl.CostEstimate(
        flops=2 * B * N * C * E,
        transcendentals=0,
        bytes_accessed=(B * N * C + B * N * E + C * E + E) * itemsize,
    )

    ws = _working_set_bytes(C, E, tn, itemsize)
    vmem_limit = int(min(32 << 20, max(2 * ws + (4 << 20), 16 << 20)))

    return pl.pallas_call(
        _mlp_kernel,
        out_shape=jax.ShapeDtypeStruct((B, N, E), x.dtype),
        grid_spec=pltpu.PrefetchScalarGridSpec(
            num_scalar_prefetch=0,
            grid=grid,
            in_specs=[
                # x tile: (C, TN) — token tile on lanes (>=128), C on sublanes.
                pl.BlockSpec((None, C, tn), lambda bi, j: (bi, 0, j)),
                # weight & bias: resident across the whole grid.
                pl.BlockSpec((C, E), lambda bi, j: (0, 0)),
                pl.BlockSpec((1, E), lambda bi, j: (0, 0)),
            ],
            out_specs=pl.BlockSpec((None, tn, E), lambda bi, j: (bi, j, 0)),
        ),
        compiler_params=pltpu.CompilerParams(
            dimension_semantics=("parallel", "parallel"),
            vmem_limit_bytes=vmem_limit),
        cost_estimate=cost,
    )(x, w, b2)


if __name__ == "__main__":
    # Small shapes consistent with the module: input_dim=C=32, embed_dim=E=64.
    B, C, H, W = 2, 32, 16, 16
    E = 64

    key = jax.random.PRNGKey(0)
    kx, kw, kb = jax.random.split(key, 3)

    x = jax.random.normal(kx, (B, C, H, W), dtype=jnp.float32)
    # Deterministic "Linear" params (nn.Linear(input_dim=C, embed_dim=E)):
    # PyTorch stores weight as (E, C); we keep it as (C, E) for y = x @ W + b.
    w = (jax.random.uniform(kw, (C, E), dtype=jnp.float32) - 0.5) * (2.0 / jnp.sqrt(C))
    b = (jax.random.uniform(kb, (E,), dtype=jnp.float32) - 0.5) * (2.0 / jnp.sqrt(C))

    out = mlp_forward(x, w, b)
    out = jax.block_until_ready(out)

    # Reference check (plain JAX, full precision) for correctness.
    N = H * W
    ref = jnp.einsum("bcn,ce->bne", x.reshape(B, C, N), w,
                     precision=lax.Precision.HIGHEST) + b
    assert out.shape == (B, N, E)
    assert jnp.allclose(out, ref, atol=1e-4, rtol=1e-4)

    print("KERNEL_OK")
</pallas_src>

<mosaic_0001>
module attributes {stable_mosaic.version = 11 : i64} {
  func.func @_mlp_kernel(%arg0: i32, %arg1: i32, %arg2: memref<1x32x128xf32, #tpu.memory_space<vmem>>, %arg3: memref<32x64xf32, #tpu.memory_space<vmem>>, %arg4: memref<1x64xf32, #tpu.memory_space<vmem>>, %arg5: memref<1x128x64xf32, #tpu.memory_space<vmem>>) attributes {dimension_semantics = [#tpu.dimension_semantics<parallel>, #tpu.dimension_semantics<parallel>], iteration_bounds = array<i64: 2, 2>, scalar_prefetch = 0 : i64, scratch_operands = 0 : i64, tpu.core_type = #tpu.core_type<tc>, window_params = [{transform_indices = @transform_0, window_bounds = array<i64: 1, 32, 128>}, {pipeline_mode = #tpu.pipeline_mode<synchronous>, transform_indices = @transform_1, window_bounds = array<i64: 32, 64>}, {pipeline_mode = #tpu.pipeline_mode<synchronous>, transform_indices = @transform_2, window_bounds = array<i64: 1, 64>}, {transform_indices = @transform_3, window_bounds = array<i64: 1, 128, 64>}]} {
    %c0 = arith.constant 0 : index
    %c0_0 = arith.constant 0 : index
    %c0_1 = arith.constant 0 : index
    %0 = vector.load %arg2[%c0, %c0_0, %c0_1] : memref<1x32x128xf32, #tpu.memory_space<vmem>>, vector<1x32x128xf32>
    %1 = vector.shape_cast %0 : vector<1x32x128xf32> to vector<32x128xf32>
    %c0_2 = arith.constant 0 : index
    %c0_3 = arith.constant 0 : index
    %2 = vector.load %arg3[%c0_2, %c0_3] : memref<32x64xf32, #tpu.memory_space<vmem>>, vector<32x64xf32>
    %cst = arith.constant dense<0.000000e+00> : vector<128x64xf32>
    %3 = tpu.matmul %1, %2, %cst {dimension_numbers = #tpu.dot_dimension_numbers<[0], [0], [1], [1], [0, 1, 1, 1], [], []>} : vector<32x128xf32>, vector<32x64xf32>, vector<128x64xf32> -> vector<128x64xf32>
    %c0_4 = arith.constant 0 : index
    %c0_5 = arith.constant 0 : index
    %4 = vector.load %arg4[%c0_4, %c0_5] : memref<1x64xf32, #tpu.memory_space<vmem>>, vector<1x64xf32>
    %5 = vector.broadcast %4 : vector<1x64xf32> to vector<128x64xf32>
    %6 = arith.addf %3, %5 : vector<128x64xf32>
    %c0_6 = arith.constant 0 : index
    %c0_7 = arith.constant 0 : index
    %c0_8 = arith.constant 0 : index
    %7 = vector.load %arg5[%c0_6, %c0_7, %c0_8] : memref<1x128x64xf32, #tpu.memory_space<vmem>>, vector<1x128x64xf32>
    %8 = vector.shape_cast %7 : vector<1x128x64xf32> to vector<128x64xf32>
    %9 = vector.shape_cast %6 : vector<128x64xf32> to vector<1x128x64xf32>
    tpu.vector_store %arg5[%c0_6, %c0_7, %c0_8], %9 {strides = array<i32>} : memref<1x128x64xf32, #tpu.memory_space<vmem>>, vector<1x128x64xf32>,
    return
  }
  func.func @transform_0(%arg0: i32, %arg1: i32) -> (i32, i32, i32) {
    %c0_i32 = arith.constant 0 : i32
    %c0_i32_0 = arith.constant 0 : i32
    return %arg0, %c0_i32, %arg1 : i32, i32, i32
  }
  func.func @transform_1(%arg0: i32, %arg1: i32) -> (i32, i32) {
    %c0_i32 = arith.constant 0 : i32
    %c0_i32_0 = arith.constant 0 : i32
    %c0_i32_1 = arith.constant 0 : i32
    return %c0_i32, %c0_i32_0 : i32, i32
  }
  func.func @transform_2(%arg0: i32, %arg1: i32) -> (i32, i32) {
    %c0_i32 = arith.constant 0 : i32
    %c0_i32_0 = arith.constant 0 : i32
    %c0_i32_1 = arith.constant 0 : i32
    return %c0_i32, %c0_i32_0 : i32, i32
  }
  func.func @transform_3(%arg0: i32, %arg1: i32) -> (i32, i32, i32) {
    %c0_i32 = arith.constant 0 : i32
    %c0_i32_0 = arith.constant 0 : i32
    return %arg0, %arg1, %c0_i32 : i32, i32, i32
  }
}

</mosaic_0001>

<bundles_post_ra>
// kernel: tpu_custom_call.1
= control target key start
LH: loop header
LB: loop body
LE: loop exit
PB: predicated region body
PF: predicated region fallthrough
CT: control target
= control target key end

     0   :  { %8 = vsyncpa [#allocation3], 0  ;;  %s1182_s0 = inlined_call_operand.hbm [shape: f32[2,32,256], index: 0, kind: input, shape index: {}]   ;;  %s1183_s1 = inlined_call_operand.hbm [shape: f32[32,64], index: 1, kind: input, shape index: {}]   ;;  %s1184_s2 = inlined_call_operand.vmem [shape: f32[1,64], index: 2, kind: input, shape index: {}]   ;;  %s1185_s3 = inlined_call_operand.vmem [shape: f32[2,256,64], index: 3, kind: output, shape index: {}]  }
   0x1   :  { %10 = vsyncpa [#allocation3 + $0x1], 0 }
   0x2   :  { %11 = vsyncpa [#allocation5], 0  ;;  %s935_s12 = smov 0   ;;  %s937_s13 = smov 0  }
   0x3   :  { %s939_s14 = smov 0   ;;  %s941_s15 = smov 0  }
   0x4   :  { %s943_s16 = smov 0   ;;  %s945_s17 = smov 0  }
   0x5   :  { %s947_s18 = smov 0   ;;  %s949_s19 = smov 0  }
   0x6 LB: > { %s597_s20 = sadd.s32 4294967295, %s908_s19   ;;  %p45_p0 = scmp.ne.s32.totalorder %s888_s14, %s884_s13  ;;  %s908_s19 = sphi %s949_s19, %s17_s19   ;;  %s904_s18 = sphi %s947_s18, %s1210_s18   ;;  %s900_s17 = sphi %s945_s17, %s1209_s17   ;;  %s896_s16 = sphi %s943_s16, %s1208_s16   ;;  %s892_s15 = sphi %s941_s15, %s1207_s15   ;;  %s888_s14 = sphi %s939_s14, %s1206_s14   ;;  %s884_s13 = sphi %s937_s13, %s1205_s13   ;;  %s880_s12 = sphi %s935_s12, %s1204_s12  }
   0x7   : > { %p46_p1 = scmp.eq.s32.totalorder %s908_s19, 0  ;;  %p51_p2 = scmp.ne.s32.totalorder %s884_s13, %s880_s12 }
   0x8   : > { %p979_p3 = scmp.eq.s32.totalorder %s597_s20, 0  ;;  %p599_p5 = scmp.ge.s32.totalorder %s908_s19, 1 }
   0x9   : > { %p47_p4 = por %p46_p1, %p45_p0  ;;  %p132_p7 = scmp.lt.s32.totalorder %s908_s19, 5 }
   0xa   : > { %s1192_s22 = scalar_select %p979_p3, 1, 0 }
   0xb   : > { %p986_p6 = por %p979_p3, %p51_p2  ;;  %p991_p8 = pnand %p599_p5, %p132_p7 }
   0xc   : > { %s910_s25 = smov [#allocation4]   ;;  %p709_p10 = scmp.lt.s32.totalorder %s908_s19, 4 }
   0xd   : > { %s1193_s23 = scalar_select %p986_p6, 1, 0 }
   0xe   : > { %s1194_s24 = scalar_select %p991_p8, 1, 0 }
   0xf   : > { %s144_s26 = sshll.u32 %s910_s25, 4  ;;  %p700_p9 = pneg %p991_p8  ;;  %s145_s26 = int_to_ptr.vmem [resolvable:$true] %s144_s26 }
  0x10   : > { %p1004_p12 = pnand %p709_p10, %p47_p4  ;;  %s780_s4 = scalar_lea.hbm %s1183_s1, 512 }
  0x11   : > { %p1000_p11 = pnand %p700_p9, %p979_p3  ;;  %p781_p13 = scmp.ne.s32.totalorder %s1183_s1, %s780_s4 }
  0x12   : > { %s1196_s28 = scalar_select %p1004_p12, 1, 0 }
  0x13   : > { %p782_p0 = pneg %p1000_p11  ;;  %p787_p5 = scmp.lt.u32.totalorder %s780_s4, %s1183_s1 }
  0x15   : > { %p783_p1 = pnand %p782_p0, %p781_p13 }
  0x17   : > { %p784_p2 = pneg %p783_p1 }
  0x19   : > { %p789_p4 = pnand %p787_p5, %p784_p2 }
  0x1b   : > { %792 = shalt.err (!%p789_p4)
}
  0x1c   : > { %s793_s9 = scalar_lea.vmem %s145_s26, 512  ;;  %p801_p3 = scmp.lt.s32.totalorder %s145_s26, %s145_s26 }
  0x1d   : > { %p794_p7 = scmp.ne.s32.totalorder %s145_s26, %s793_s9  ;;  %p802_p6 = scmp.lt.s32.totalorder %s793_s9, %s793_s9 }
  0x1f   : > { %p796_p9 = pnand %p794_p7, %p782_p0  ;;  %p803_p8 = por %p802_p6, %p801_p3 }
  0x21   : > { %p797_p10 = pneg %p796_p9 }
  0x23   : > { %p804_p12 = pnand %p803_p8, %p797_p10 }
  0x25   : > { %807 = shalt.err (!%p804_p12)
}
  0x26   : > { %s1191_s10 = smov 128   ;;  %s912_s11 = smov 8  }
  0x27   : > { %703 = dma.hbm_to_vmem [thread:$0]  (!%p1000_p11), %s1183_s1, 512, %s145_s26, [#allocation5], %s1191_s10, %s1191_s10, %s912_s11  }
  0x28   : > { %s26_s25 = sadd.s32 1, %s900_s17  ;;  %s29_s29 = sadd.s32 1, %s904_s18 }
  0x29   : > { %p27_p3 = scmp.ge.s32.totalorder %s26_s25, 2  ;;  %s161_s30 = sand.u32 1, %s888_s14  }
  0x2a   : > { %s602_s4 = sshll.u32 %s161_s30, 5  ;;  %s603_s27 = sshll.u32 %s904_s18, 3 }
  0x2b   : > { %s1212_s25 = smov (%p27_p3, %s26_s25), 0  ;;  %s1214_s29 = smov (!%p27_p3, %s29_s29), %s904_s18 }
  0x2c   : > { %s34_s5 = ssub.s32 %s900_s17, %s1212_s25  ;;  %p31_p6 = scmp.ge.s32.totalorder %s1214_s29, 2 }
  0x2d   : > { %s170_s6 = sadd.s32 %s900_s17, %s603_s27  ;;  %s165_s7 = scalar_lea.vmem [#allocation2], %s602_s4 }
  0x2e   : > { %s173_s8 = sshll.u32 %s165_s7, 4  ;;  %s1216_s29 = smov (%p31_p6, %s1214_s29), 0  ;;  %s1039_s8 = int_to_ptr.vmem [resolvable:$true] %s173_s8 }
  0x2f   : > { %s604_s26 = sshll.u32 %s170_s6, 7  ;;  %s33_s9 = ssub.s32 %s904_s18, %s1216_s29 }
  0x30   : > { %s1046_s21 = scalar_lea.hbm %s1182_s0, %s604_s26  ;;  %s1048_s10 = sor.u32 %s34_s5, %s33_s9 }
  0x31   : > { %p36_p8 = scmp.eq.s32.totalorder %s1048_s10, 0  ;;  %s1051_s4 = scalar_lea.sflag [#allocation3], %s161_s30 }
  0x32   : > { %s808_s27 = scalar_lea.hbm %s1046_s21, 512  ;;  %p1197_p12 = scmp.ne.s32.totalorder %s1196_s28, 0 }
  0x33   : > { %p809_p11 = scmp.ne.s32.totalorder %s1046_s21, %s808_s27  ;;  %s813_s26 = scalar_lea.hbm %s1182_s0, 2048 }
  0x34   : > { %p810_p13 = pneg %p1197_p12  ;;  %p814_p2 = scmp.lt.u32.totalorder %s1046_s21, %s1182_s0 }
  0x35   : > { %p815_p5 = scmp.lt.u32.totalorder %s813_s26, %s808_s27  ;;  %p817_p7 = scmp.lt.u32.totalorder %s808_s27, %s1046_s21 }
  0x36   : > { %p811_p0 = pnand %p810_p13, %p809_p11 }
  0x37   : > { %p816_p4 = por %p815_p5, %p814_p2 }
  0x38   : > { %p812_p1 = pneg %p811_p0 }
  0x39   : > { %p818_p9 = por %p817_p7, %p816_p4 }
  0x3b   : > { %p819_p10 = pnand %p818_p9, %p812_p1 }
  0x3d   : > { %822 = shalt.err (!%p819_p10)
}
  0x3e   : > { %s823_s30 = scalar_lea.vmem %s1039_s8, 512  ;;  %s913_s5 = smov [#allocation2]  }
  0x3f   : > { %p824_p3 = scmp.ne.s32.totalorder %s1039_s8, %s823_s30  ;;  %s828_s9 = sshll.u32 %s913_s5, 4  ;;  %s829_s9 = int_to_ptr.vmem [resolvable:$false] %s828_s9 }
  0x40   : > { %s830_s6 = scalar_lea.vmem %s829_s9, 1024  ;;  %p831_p0 = scmp.lt.s32.totalorder %s1039_s8, %s829_s9 }
  0x41   : > { %p826_p6 = pnand %p824_p3, %p810_p13  ;;  %p832_p2 = scmp.lt.s32.totalorder %s830_s6, %s823_s30 }
  0x43   : > { %p827_p11 = pneg %p826_p6  ;;  %p833_p5 = por %p832_p2, %p831_p0 }
  0x45   : > { %p834_p4 = pnand %p833_p5, %p827_p11 }
  0x47   : > { %837 = shalt.err (!%p834_p4)
}
  0x48   : > { %s914_s27 = smov 256   ;;  %s1198_s7 = smov 128  }
  0x49   : > { %707 = dma.hbm_to_vmem [thread:$0]  (!%p1197_p12), %s1046_s21, 512, %s1039_s8, %s1051_s4, %s914_s27, %s1198_s7, %s912_s11  }
  0x4a   : > { %s1199_s26 = sadd.s32 1, %s888_s14  ;;  %p1200_p13 = scmp.ne.s32.totalorder %s1194_s24, 0 }
  0x4b   : > { %s1086_s12 = scalar_select %p36_p8, %s888_s14, %s1199_s26  }
  0x4c   : > { %185 = sbr.rel (%p1200_p13) target bundleno = 493 (0x1ed), region = 32  ;;  %s187_s20 = sand.u32 (!%p1200_p13), 1, %s884_s13  }
  0x4d   : > { %s606_s28 = sshll.u32 (!%p1200_p13), %s187_s20, 5  ;;  %s188_s30 = scalar_lea.sflag (!%p1200_p13), [#allocation3], %s187_s20 }
  0x4e   : > { %s191_s5 = scalar_lea.vmem (!%p1200_p13), [#allocation2], %s606_s28  ;;  %p1201_p1 = scmp.ne.s32.totalorder (!%p1200_p13), %s1193_s23, 0 }
  0x53   : > { %871 = dma.done.wait (%p1201_p1), %s188_s30, 512  }
  0x54   : > { %873 = vsyncadd (%p1201_p1), %s188_s30, 4294966784  ;;  %p1202_p12 = scmp.ne.s32.totalorder %s1192_s22, 0 }
  0x56   : > { %875 = dma.done.wait (%p1202_p12), [#allocation5], 512  }
  0x57   : > { %877 = vsyncadd (%p1202_p12), [#allocation5], 4294966784  ;;  %v232_v0 = vld [vmem:[%s191_s5] sm:$0xff]  ;;  %v237_v2 = vld [vmem:[#allocation4 + $0x8] sm:$0xff]  ;;  %vm279_vm0 = vcmask 261120   ;;  %s608_s21 = sshll.u32 %s892_s15, 4 }
  0x58   : > { %247 = vxpose.xlu0.b32.start [1/4] (short) %v232_v0, 128  ;;  %v236_v1 = vld [vmem:[#allocation4] sm:$0xff]  ;;  %v233_v3 = vld [vmem:[%s191_s5 + $0x8] sm:$0xff]  ;;  %v238_v5 = vld [vmem:[#allocation4 + $0x10] sm:$0xff]  ;;  %p223_p8 = scmp.lt.s32.totalorder %s896_s16, 1  ;;  %p225_p7 = scmp.lt.s32.totalorder %s608_s21, 31  ;;  %vm473_vm1 = vcmask 523264  }
  0x59   : > { %v682_v4 = vpack.c.bf16 %v237_v2, %v236_v1  ;;  %v239_v6 = vld [vmem:[#allocation4 + $0x18] sm:$0xff]  ;;  %v234_v8 = vld [vmem:[%s191_s5 + $0x10] sm:$0xff]  ;;  %v611_v26 = vld [vmem:[%s1184_s2] ss:$0 sm:$0xff] }
  0x5a   : > { %v686_v7 = vpack.c.bf16 %v239_v6, %v238_v5  ;;  %v235_v9 = vld [vmem:[%s191_s5 + $0x18] sm:$0xff]  ;;  %s1218_s16 = smov (!%p223_p8, %s896_s16), 1  ;;  %s1220_s21 = smov (!%p225_p7, %s608_s21), 31 }
  0x5b   : > { %683 = vmatprep.subr.bf16.mxu0 %v682_v4  ;;  %690 = vmatprep.subr.bf16.mxu1 %v682_v4  ;;  %s609_s22 = sshll.u32 %s1218_s16, 5 }
  0x5c   : > { %248 = vxpose.xlu0.b32.cont [2/4] (short) %v233_v3, 128  ;;  %685 = vmatpush3.bf16.msra.mxu0 %v682_v4  ;;  %s228_s23 = sadd.s32 %s609_s22, %s1220_s21 }
  0x5d   : > { %687 = vmatprep.subr.bf16.mxu0 %v686_v7  ;;  %692 = vmatpush3.bf16.msra.mxu1 %v682_v4  ;;  %s610_s24 = sshll.u32 %s228_s23, 3 }
  0x5e   : > { %691 = vmatprep.subr.bf16.mxu1 %v686_v7  ;;  %s1124_s9 = scalar_lea.vmem %s1185_s3, %s610_s24 }
  0x60   : > { %249 = vxpose.xlu0.b32.cont [3/4] (short) %v234_v8, 128  ;;  %689 = vmatpush3.bf16.msra.mxu0 %v686_v7 }
  0x61   : > { %693 = vmatpush3.bf16.msra.mxu1 %v686_v7 }
  0x64   : > { %250 = vxpose.xlu0.b32.end [4/4] (short) %v235_v9, 128 }
  0xd8   : > { %v263_v10 = vpop.trf.xlu0 }
  0xd9   : > { %658 = vmatprep.mubr.msk.f32.mxu0 %vm279_vm0, %v263_v10 }
  0xdc   : > { %v264_v11 = vpop.trf.xlu0 }
  0xdd   : > { %659 = vmatmul.mubr.msk.f32.vlgmr.msra.gmra.mrb[0].mxu0 %vm279_vm0, %v264_v11 }
  0xe0   : > { %v265_v12 = vpop.trf.xlu0 }
  0xe1   : > { %661 = vmatprep.mubr.msk.f32.mxu0 %vm279_vm0, %v265_v12 }
  0xe4   : > { %v266_v13 = vpop.trf.xlu0 }
  0xe5   : > { %662 = vmatmul.mubr.msk.f32.gmra.mrb[2].mxu0 %vm279_vm0, %v266_v13 }
  0xe8   : > { %v267_v14 = vpop.trf.xlu0 }
  0xe9   : > { %664 = vmatprep.mubr.msk.f32.mxu0 %vm279_vm0, %v267_v14 }
  0xec   : > { %v268_v15 = vpop.trf.xlu0 }
  0xed   : > { %665 = vmatmul.mubr.msk.f32.gmra.mrb[4].mxu0 %vm279_vm0, %v268_v15 }
  0xf0   : > { %v269_v16 = vpop.trf.xlu0 }
  0xf1   : > { %667 = vmatprep.mubr.msk.f32.mxu0 %vm279_vm0, %v269_v16 }
  0xf4   : > { %v270_v17 = vpop.trf.xlu0 }
  0xf5   : > { %668 = vmatmul.mubr.msk.f32.gmra.mrb[6].mxu0 %vm279_vm0, %v270_v17 }
  0xf8   : > { %v271_v18 = vpop.trf.xlu0 }
  0xf9   : > { %670 = vmatprep.mubr.msk.f32.mxu1 %vm279_vm0, %v271_v18 }
  0xfc   : > { %v272_v19 = vpop.trf.xlu0 }
  0xfd   : > { %671 = vmatmul.mubr.msk.f32.vlgmr.msra.gmra.mrb[0].mxu1 %vm279_vm0, %v272_v19 }
 0x100   : > { %v273_v20 = vpop.trf.xlu0 }
 0x101   : > { %673 = vmatprep.mubr.msk.f32.mxu1 %vm279_vm0, %v273_v20 }
 0x104   : > { %v274_v21 = vpop.trf.xlu0 }
 0x105   : > { %674 = vmatmul.mubr.msk.f32.gmra.mrb[2].mxu1 %vm279_vm0, %v274_v21 }
 0x108   : > { %v275_v22 = vpop.trf.xlu0 }
 0x109   : > { %676 = vmatprep.mubr.msk.f32.mxu1 %vm279_vm0, %v275_v22 }
 0x10c   : > { %v276_v23 = vpop.trf.xlu0 }
 0x10d   : > { %677 = vmatmul.mubr.msk.f32.gmra.mrb[4].mxu1 %vm279_vm0, %v276_v23 }
 0x110   : > { %v277_v24 = vpop.trf.xlu0 }
 0x111   : > { %679 = vmatprep.mubr.msk.f32.mxu1 %vm279_vm0, %v277_v24 }
 0x114   : > { %v278_v25 = vpop.trf.xlu0 }
 0x115   : > { %680 = vmatmul.mubr.msk.f32.gmra.mrb[6].mxu1 %vm279_vm0, %v278_v25 }
 0x1b0   : > { %v660_v27 = vpop.f32.mrb[0].mxu0 }
 0x1b1   : > { %v400_v28 = vadd.f32 %v660_v27, %v611_v26  ;;  %v394_v29 = vpop.f32.mrb[1].mxu0 }
 0x1b2   : > { %v395_v30 = vadd.f32 %v611_v26, %v394_v29 }
 0x1b3   : > { %475 = vst.msk [vmem:[%s1124_s9 + $0x8] sm:$0xff] %vm473_vm1, %v400_v28 }
 0x1b4   : > { %474 = vst.msk [vmem:[%s1124_s9] sm:$0xff] %vm473_vm1, %v395_v30 }
 0x1b8   : > { %v663_v31 = vpop.f32.mrb[2].mxu0 }
 0x1b9   : > { %v410_v32 = vadd.f32 %v663_v31, %v611_v26  ;;  %v404_v33 = vpop.f32.mrb[3].mxu0 }
 0x1ba   : > { %v405_v34 = vadd.f32 %v611_v26, %v404_v33 }
 0x1bb   : > { %477 = vst.msk [vmem:[%s1124_s9 + $0x18] sm:$0xff] %vm473_vm1, %v410_v32 }
 0x1bc   : > { %476 = vst.msk [vmem:[%s1124_s9 + $0x10] sm:$0xff] %vm473_vm1, %v405_v34 }
 0x1c0   : > { %v666_v35 = vpop.f32.mrb[4].mxu0 }
 0x1c1   : > { %v420_v36 = vadd.f32 %v666_v35, %v611_v26  ;;  %v414_v37 = vpop.f32.mrb[5].mxu0 }
 0x1c2   : > { %v415_v38 = vadd.f32 %v611_v26, %v414_v37 }
 0x1c3   : > { %479 = vst.msk [vmem:[%s1124_s9 + $0x28] sm:$0xff] %vm473_vm1, %v420_v36 }
 0x1c4   : > { %478 = vst.msk [vmem:[%s1124_s9 + $0x20] sm:$0xff] %vm473_vm1, %v415_v38 }
 0x1c8   : > { %v669_v39 = vpop.f32.mrb[6].mxu0 }
 0x1c9   : > { %v430_v40 = vadd.f32 %v669_v39, %v611_v26  ;;  %v424_v41 = vpop.f32.mrb[7].mxu0 }
 0x1ca   : > { %v425_v42 = vadd.f32 %v611_v26, %v424_v41 }
 0x1cb   : > { %481 = vst.msk [vmem:[%s1124_s9 + $0x38] sm:$0xff] %vm473_vm1, %v430_v40 }
 0x1cc   : > { %480 = vst.msk [vmem:[%s1124_s9 + $0x30] sm:$0xff] %vm473_vm1, %v425_v42 }
 0x1d0   : > { %v672_v43 = vpop.f32.mrb[0].mxu1 }
 0x1d1   : > { %v440_v44 = vadd.f32 %v672_v43, %v611_v26  ;;  %v434_v45 = vpop.f32.mrb[1].mxu1 }
 0x1d2   : > { %v435_v46 = vadd.f32 %v611_v26, %v434_v45 }
 0x1d3   : > { %483 = vst.msk [vmem:[%s1124_s9 + $0x48] sm:$0xff] %vm473_vm1, %v440_v44 }
 0x1d4   : > { %482 = vst.msk [vmem:[%s1124_s9 + $0x40] sm:$0xff] %vm473_vm1, %v435_v46 }
 0x1d8   : > { %v675_v47 = vpop.f32.mrb[2].mxu1 }
 0x1d9   : > { %v450_v48 = vadd.f32 %v675_v47, %v611_v26  ;;  %v444_v49 = vpop.f32.mrb[3].mxu1 }
 0x1da   : > { %v445_v50 = vadd.f32 %v611_v26, %v444_v49 }
 0x1db   : > { %485 = vst.msk [vmem:[%s1124_s9 + $0x58] sm:$0xff] %vm473_vm1, %v450_v48 }
 0x1dc   : > { %484 = vst.msk [vmem:[%s1124_s9 + $0x50] sm:$0xff] %vm473_vm1, %v445_v50 }
 0x1e0   : > { %v678_v51 = vpop.f32.mrb[4].mxu1 }
 0x1e1   : > { %v460_v52 = vadd.f32 %v678_v51, %v611_v26  ;;  %v454_v53 = vpop.f32.mrb[5].mxu1 }
 0x1e2   : > { %v455_v54 = vadd.f32 %v611_v26, %v454_v53 }
 0x1e3   : > { %487 = vst.msk [vmem:[%s1124_s9 + $0x68] sm:$0xff] %vm473_vm1, %v460_v52 }
 0x1e4   : > { %486 = vst.msk [vmem:[%s1124_s9 + $0x60] sm:$0xff] %vm473_vm1, %v455_v54 }
 0x1e8   : > { %v681_v55 = vpop.f32.mrb[6].mxu1 }
 0x1e9   : > { %v470_v56 = vadd.f32 %v681_v55, %v611_v26  ;;  %v464_v57 = vpop.f32.mrb[7].mxu1 }
 0x1ea   : > { %v465_v58 = vadd.f32 %v611_v26, %v464_v57 }
 0x1eb   : > { %489 = vst.msk [vmem:[%s1124_s9 + $0x78] sm:$0xff] %vm473_vm1, %v470_v56 }
 0x1ec   : > { %488 = vst.msk [vmem:[%s1124_s9 + $0x70] sm:$0xff] %vm473_vm1, %v465_v58 }
 0x1ed PF: > { %s17_s19 = sadd.s32 1, %s908_s19   ;;  %s1203_s15 = smov %s1086_s12 }
 0x1ee   : > { %p14_p9 = scmp.ge.s32.totalorder %s17_s19, 6   ;;  %s1204_s12 = smov %s884_s13 }
 0x1ef   : > { %s1205_s13 = smov %s888_s14  ;;  %s1206_s14 = smov %s1203_s15 }
 0x1f0   : > { %s1207_s15 = smov %s900_s17  ;;  %s1208_s16 = smov %s904_s18 }
 0x1f1   : > { %s1209_s17 = smov %s1212_s25  ;;  %s1210_s18 = smov %s1216_s29 }
 0x1f2   :  { %16 = sbr.rel (!%p14_p9) target bundleno = 6 (0x6), region = 76 }
 0x1f9   :  { %520 = vsyncpa [#allocation3], 1 }
 0x1fa   :  { %522 = vsyncpa [#allocation3 + $0x1], 1 }
 0x1fb   :  { %523 = vsyncpa [#allocation5], 1 }

</bundles_post_ra>
